<compile_context>
chip_gen: v7x
topology: tpu7x:2x2x1
jax: 0.10.0
libtpu: 0.0.40
codegen_flags: <defaults>
</compile_context>

<pallas_src>
import jax
import jax.numpy as jnp
from jax import lax
from jax.experimental import pallas as pl
from jax.experimental.pallas import tpu as pltpu

LANES = 128
SUBLANES = 8
# ~4 MiB of each input per grid step (8192 f32 rows / 16384 bf16 rows); scaled
# by itemsize so bf16/int8 inputs keep the same bytes-per-step.
TARGET_BLOCK_BYTES = 4 << 20
# In-kernel compute chunk: bounds elementwise temporaries to ~256 KiB f32 so a
# large DMA block does not inflate Mosaic's VMEM temporaries.
COMPUTE_CHUNK_ROWS = 512
# Double-buffered input blocks must stay well inside v7x's 64 MiB physical VMEM
# (v5e/v6e have 128 MiB).
MAX_INPUT_BUFFER_BYTES = 40 << 20


def _tensorcores_per_device():
    """TensorCores per JAX device: 1 on v5e/v6e, 2 on dual-TC/megacore chips."""
    try:
        kind = jax.devices()[0].device_kind.lower()
    except Exception:
        return 1
    if "lite" in kind or "v5e" in kind or "v6e" in kind:
        return 1
    if any(tag in kind for tag in ("v7", "v5p", "v4")):
        return 2
    return 1


def _make_accuracy_kernel(threshold, n_elems, row_block, chunk, n_chunks,
                          total_blocks, mask_needed):
    """Kernel body factory; every argument is a compile-time constant."""
    n_full_rows = n_elems // LANES          # rows that are entirely valid
    rem_lanes = n_elems % LANES             # valid lanes in the partial row

    def kernel(pr_ref, gt_ref, out_ref):
        p = pl.program_id(0)                # core ("parallel") axis
        s = pl.program_id(1)                # sequential reduction axis
        steps = pl.num_programs(1)
        blk = p * steps + s                 # logical block index

        # The output block (1, 8, 128) is resident across the whole s-slice:
        # zero it once, accumulate into it directly (no scratch, no epilogue).
        @pl.when(s == 0)
        def _():
            out_ref[...] = jnp.zeros_like(out_ref)

        def chunk_body(masked):
            def body(c, acc):
                r0 = pl.multiple_of(c * chunk, SUBLANES)
                pr = pr_ref[pl.ds(r0, chunk), :]
                gt = gt_ref[pl.ds(r0, chunk), :]
                if threshold is not None:
                    # Exact reference semantics (valid for non-binary gt):
                    #   gt == (pr > thr).astype(pr.dtype)
                    m = gt == (pr > threshold).astype(pr.dtype)
                else:
                    # threshold=None path keeps the reference's raw equality.
                    m = gt == pr
                if masked:
                    # Row/lane compared separately (no int32 flat-index
                    # overflow for huge tensors).
                    row0 = blk * row_block + r0
                    row_ids = row0 + lax.broadcasted_iota(
                        jnp.int32, (chunk, LANES), 0)
                    if rem_lanes == 0:
                        valid = row_ids < n_full_rows
                    else:
                        lane_ids = lax.broadcasted_iota(
                            jnp.int32, (chunk, LANES), 1)
                        valid = (row_ids < n_full_rows) | (
                            (row_ids == n_full_rows) & (lane_ids < rem_lanes))
                    m = jnp.logical_and(m, valid)
                # Fold the chunk into an (8, 128) vreg-shaped partial with pure
                # VALU adds over tile-aligned static slices (no XLU sublane
                # reduce, no sub-vreg stores); cross-lane reduce is deferred to
                # the wrapper.
                m_i32 = m.astype(jnp.int32)
                part = m_i32[0:SUBLANES, :]
                for g in range(1, chunk // SUBLANES):
                    part = part + m_i32[g * SUBLANES:(g + 1) * SUBLANES, :]
                return acc + part
            return body

        def run(masked):
            acc = lax.fori_loop(0, n_chunks, chunk_body(masked),
                                jnp.zeros((SUBLANES, LANES), jnp.int32))
            out_ref[0] += acc

        if not mask_needed:
            run(False)
        else:
            # Only the last real block and any clamped duplicate blocks can
            # contain invalid elements; keep the steady-state loop mask-free.
            is_edge = blk >= total_blocks - 1

            @pl.when(jnp.logical_not(is_edge))
            def _():
                run(False)

            @pl.when(is_edge)
            def _():
                run(True)

    return kernel


def accuracy_pallas(pr, gt, threshold=0.5, ignore_channels=None,
                    block_rows=None, num_cores=None):
    """Pallas implementation of metrics.Accuracy.forward (threshold path)."""
    # TODO(synk): the 'cross-entropy' config path (argmax over dim=1) is
    # config-file dependent; the default (non-cross-entropy) threshold path is
    # implemented here.
    if ignore_channels is not None:
        channels = [c for c in range(pr.shape[1]) if c not in ignore_channels]
        idx = jnp.asarray(channels, dtype=jnp.int32)
        pr = jnp.take(pr, idx, axis=1)
        gt = jnp.take(gt, idx, axis=1)

    n_elems = int(pr.size)
    result_dtype = pr.dtype if jnp.issubdtype(pr.dtype, jnp.floating) else jnp.float32

    # Keep native dtypes — the kernel is HBM-bandwidth bound.
    pr_flat = pr.reshape(-1)
    gt_flat = gt.reshape(-1)

    # Pad to a multiple of 8*128 (at most 1023 elements) so every block and
    # every in-kernel 8-row group is a legal (8, 128)-aligned tile.  Padded
    # elements are masked in-kernel, so pad values are irrelevant.
    padded = -(-n_elems // (SUBLANES * LANES)) * (SUBLANES * LANES)
    if padded != n_elems:
        pr_flat = jnp.pad(pr_flat, (0, padded - n_elems))
        gt_flat = jnp.pad(gt_flat, (0, padded - n_elems))
    rows = padded // LANES
    pr2 = pr_flat.reshape(rows, LANES)
    gt2 = gt_flat.reshape(rows, LANES)

    item_pr = jnp.dtype(pr2.dtype).itemsize
    item_gt = jnp.dtype(gt2.dtype).itemsize
    if block_rows is None:
        block_rows = TARGET_BLOCK_BYTES // (LANES * max(item_pr, item_gt))
    # Cap so 2 inputs x 2 pipeline buffers fit comfortably in VMEM everywhere.
    max_rows = MAX_INPUT_BUFFER_BYTES // (2 * LANES * (item_pr + item_gt))
    block_rows = max(SUBLANES, min(int(block_rows), int(max_rows)))
    block_rows = (block_rows // SUBLANES) * SUBLANES
    row_block = rows if rows <= block_rows else block_rows

    chunk = COMPUTE_CHUNK_ROWS if row_block % COMPUTE_CHUNK_ROWS == 0 else row_block
    n_chunks = row_block // chunk

    total_blocks = pl.cdiv(rows, row_block)
    if num_cores is None:
        num_cores = _tensorcores_per_device()
    num_cores = max(1, min(int(num_cores), int(total_blocks)))
    steps = pl.cdiv(total_blocks, num_cores)

    # Masking only when there is element padding, a partial last block, or
    # duplicated (clamped) trailing blocks from the core split.
    mask_needed = (n_elems != rows * LANES
                   or rows % row_block != 0
                   or num_cores * steps != total_blocks)

    kernel = _make_accuracy_kernel(threshold, n_elems, row_block, chunk,
                                   n_chunks, int(total_blocks), mask_needed)

    def in_idx(p, s):
        # Clamp duplicate trailing blocks into range; they are fully masked.
        return (jnp.minimum(p * steps + s, total_blocks - 1), 0)

    in_spec = pl.BlockSpec((row_block, LANES), in_idx)
    # TODO(synk): if a trace on a dual-TC chip shows exposed DMA between steps,
    # sweep pipeline_mode=pl.Buffered(3) on the input specs (VMEM budget below
    # leaves headroom for it).

    # Explicit VMEM budget: 2 inputs x 2 pipeline buffers + chunk temporaries
    # + headroom.  Raising past v5e's 16 MiB default is free (128 MiB physical)
    # and the cap keeps us inside v7x's 64 MiB physical VMEM.
    buf_bytes = 2 * row_block * LANES * (item_pr + item_gt)
    tmp_bytes = 8 * chunk * LANES * 4
    vmem_limit = int(min(max(buf_bytes + tmp_bytes + (4 << 20), 32 << 20),
                         60 << 20))

    partials = pl.pallas_call(
        kernel,
        out_shape=jax.ShapeDtypeStruct((num_cores, SUBLANES, LANES), jnp.int32),
        grid_spec=pltpu.PrefetchScalarGridSpec(
            num_scalar_prefetch=0,
            grid=(num_cores, steps),
            in_specs=[in_spec, in_spec],
            out_specs=pl.BlockSpec((1, SUBLANES, LANES), lambda p, s: (p, 0, 0)),
        ),
        compiler_params=pltpu.CompilerParams(
            # TODO(synk): if profiling on v7x shows the "parallel" axis is not
            # sharded across the two TensorCores, switch axis 0 to
            # pltpu.CORE_PARALLEL (axis size equals the detected core count).
            dimension_semantics=("parallel", "arbitrary"),
            vmem_limit_bytes=vmem_limit),
    )(pr2, gt2)

    # Final cross-lane / cross-sublane / cross-core reduction in exact int32.
    total = jnp.sum(partials)
    return (total.astype(jnp.float32) / jnp.float32(n_elems)).astype(result_dtype)


def accuracy_reference(pr, gt, threshold=0.5):
    """Pure-JAX reference matching the torch module."""
    pr_t = (pr > threshold).astype(pr.dtype)
    tp = jnp.sum((gt == pr_t).astype(jnp.float32))
    return tp / gt.size


if __name__ == "__main__":
    key = jax.random.PRNGKey(0)
    k1, k2, k3, k4, k5, k6, k7, k8 = jax.random.split(key, 8)

    # Test 1: small NCHW segmentation-style inputs (single block, no masking).
    B, C, H, W = 2, 4, 16, 16
    y_pr = jax.random.uniform(k1, (B, C, H, W), dtype=jnp.float32)
    y_gt = (jax.random.uniform(k2, (B, C, H, W)) > 0.5).astype(jnp.float32)
    score = jax.block_until_ready(accuracy_pallas(y_pr, y_gt, threshold=0.5))
    ref = accuracy_reference(y_pr, y_gt, threshold=0.5)
    assert abs(float(score) - float(ref)) < 1e-6, (float(score), float(ref))

    # Test 2: multi-step accumulation path (small block_rows override), exact
    # partition, no masking.
    y_pr2 = jax.random.uniform(k3, (2, 4, 32, 16), dtype=jnp.float32)
    y_gt2 = (jax.random.uniform(k4, (2, 4, 32, 16)) > 0.5).astype(jnp.float32)
    score2 = jax.block_until_ready(
        accuracy_pallas(y_pr2, y_gt2, threshold=0.3, block_rows=8))
    ref2 = accuracy_reference(y_pr2, y_gt2, threshold=0.3)
    assert abs(float(score2) - float(ref2)) < 1e-6, (float(score2), float(ref2))

    # Test 3: element count not a multiple of 128 (edge-block lane/row mask).
    y_pr3 = jax.random.uniform(k5, (2, 3, 7, 5), dtype=jnp.float32)
    y_gt3 = (jax.random.uniform(k6, (2, 3, 7, 5)) > 0.5).astype(jnp.float32)
    score3 = jax.block_until_ready(accuracy_pallas(y_pr3, y_gt3, threshold=0.5))
    ref3 = accuracy_reference(y_pr3, y_gt3, threshold=0.5)
    assert abs(float(score3) - float(ref3)) < 1e-6, (float(score3), float(ref3))

    # Test 4: partial last block + forced 2-core split with a clamped,
    # fully-masked duplicate block, and non-binary gt values (exact predicate).
    y_pr4 = jax.random.uniform(k7, (2, 4, 40, 16), dtype=jnp.float32)
    y_gt4 = jnp.round(jax.random.uniform(k8, (2, 4, 40, 16)) * 2.0)  # {0,1,2}
    score4 = jax.block_until_ready(
        accuracy_pallas(y_pr4, y_gt4, threshold=0.5, block_rows=16, num_cores=2))
    ref4 = accuracy_reference(y_pr4, y_gt4, threshold=0.5)
    assert abs(float(score4) - float(ref4)) < 1e-6, (float(score4), float(ref4))

    print("KERNEL_OK")
</pallas_src>

<mosaic_0001>
module attributes {stable_mosaic.version = 11 : i64} {
  func.func @kernel(%arg0: i32, %arg1: i32, %arg2: memref<16x128xf32, #tpu.memory_space<vmem>>, %arg3: memref<16x128xf32, #tpu.memory_space<vmem>>, %arg4: memref<1x8x128xi32, #tpu.memory_space<vmem>>) attributes {dimension_semantics = [#tpu.dimension_semantics<parallel>, #tpu.dimension_semantics<arbitrary>], iteration_bounds = array<i64: 1, 1>, scalar_prefetch = 0 : i64, scratch_operands = 0 : i64, tpu.core_type = #tpu.core_type<tc>, window_params = [{transform_indices = @transform_0, window_bounds = array<i64: 16, 128>}, {transform_indices = @transform_1, window_bounds = array<i64: 16, 128>}, {transform_indices = @transform_2, window_bounds = array<i64: 1, 8, 128>}]} {
    %c0_i32 = arith.constant 0 : i32
    %0 = arith.cmpi eq, %arg1, %c0_i32 : i32
    %1 = arith.extui %0 : i1 to i32
    %c0_i32_0 = arith.constant 0 : i32
    %2 = arith.cmpi ne, %1, %c0_i32_0 : i32
    scf.if %2 {
      %c0_i32_10 = arith.constant 0 : i32
      %26 = vector.broadcast %c0_i32_10 : i32 to vector<1x8x128xi32>
      %c0_11 = arith.constant 0 : index
      %c0_12 = arith.constant 0 : index
      %c0_13 = arith.constant 0 : index
      %27 = vector.load %arg4[%c0_11, %c0_12, %c0_13] : memref<1x8x128xi32, #tpu.memory_space<vmem>>, vector<1x8x128xi32>
      tpu.vector_store %arg4[%c0_11, %c0_12, %c0_13], %26 {strides = array<i32>} : memref<1x8x128xi32, #tpu.memory_space<vmem>>, vector<1x8x128xi32>,
    } else {
    }
    %c0_i32_1 = arith.constant 0 : i32
    %3 = vector.broadcast %c0_i32_1 : i32 to vector<8x128xi32>
    %c0_i32_2 = arith.constant 0 : i32
    %c16_i32 = arith.constant 16 : i32
    %4 = arith.muli %c0_i32_2, %c16_i32 : i32
    %5 = tpu.assume_multiple %4, 8 : i32
    %6 = arith.index_cast %5 : i32 to index
    %c0 = arith.constant 0 : index
    %7 = vector.load %arg2[%6, %c0] : memref<16x128xf32, #tpu.memory_space<vmem>>, vector<16x128xf32>
    %8 = arith.index_cast %5 : i32 to index
    %c0_3 = arith.constant 0 : index
    %9 = vector.load %arg3[%8, %c0_3] : memref<16x128xf32, #tpu.memory_space<vmem>>, vector<16x128xf32>
    %cst = arith.constant 5.000000e-01 : f32
    %10 = vector.broadcast %cst : f32 to vector<16x128xf32>
    %11 = arith.cmpf ogt, %7, %10 : vector<16x128xf32>
    %12 = arith.extui %11 : vector<16x128xi1> to vector<16x128xi32>
    %13 = arith.sitofp %12 : vector<16x128xi32> to vector<16x128xf32>
    %14 = arith.cmpf oeq, %9, %13 : vector<16x128xf32>
    %15 = arith.extui %14 : vector<16x128xi1> to vector<16x128xi32>
    %16 = vector.extract_strided_slice %15 {offsets = [0, 0], sizes = [8, 128], strides = [1, 1]} : vector<16x128xi32> to vector<8x128xi32>
    %17 = vector.extract_strided_slice %15 {offsets = [8, 0], sizes = [8, 128], strides = [1, 1]} : vector<16x128xi32> to vector<8x128xi32>
    %18 = arith.addi %16, %17 : vector<8x128xi32>
    %19 = arith.addi %3, %18 : vector<8x128xi32>
    %c1_i32 = arith.constant 1 : i32
    %c0_4 = arith.constant 0 : index
    %c0_5 = arith.constant 0 : index
    %c0_6 = arith.constant 0 : index
    %20 = vector.load %arg4[%c0_4, %c0_5, %c0_6] : memref<1x8x128xi32, #tpu.memory_space<vmem>>, vector<1x8x128xi32>
    %21 = vector.shape_cast %20 : vector<1x8x128xi32> to vector<8x128xi32>
    %22 = arith.addi %21, %19 : vector<8x128xi32>
    %c0_7 = arith.constant 0 : index
    %c0_8 = arith.constant 0 : index
    %c0_9 = arith.constant 0 : index
    %23 = vector.load %arg4[%c0_7, %c0_8, %c0_9] : memref<1x8x128xi32, #tpu.memory_space<vmem>>, vector<1x8x128xi32>
    %24 = vector.shape_cast %23 : vector<1x8x128xi32> to vector<8x128xi32>
    %25 = vector.shape_cast %22 : vector<8x128xi32> to vector<1x8x128xi32>
    tpu.vector_store %arg4[%c0_7, %c0_8, %c0_9], %25 {strides = array<i32>} : memref<1x8x128xi32, #tpu.memory_space<vmem>>, vector<1x8x128xi32>,
    return
  }
  func.func @transform_0(%arg0: i32, %arg1: i32) -> (i32, i32) {
    %c1_i32 = arith.constant 1 : i32
    %0 = arith.muli %arg0, %c1_i32 : i32
    %1 = arith.addi %0, %arg1 : i32
    %c0_i32 = arith.constant 0 : i32
    %2 = arith.minsi %1, %c0_i32 : i32
    %c0_i32_0 = arith.constant 0 : i32
    %c0_i32_1 = arith.constant 0 : i32
    return %2, %c0_i32_0 : i32, i32
  }
  func.func @transform_1(%arg0: i32, %arg1: i32) -> (i32, i32) {
    %c1_i32 = arith.constant 1 : i32
    %0 = arith.muli %arg0, %c1_i32 : i32
    %1 = arith.addi %0, %arg1 : i32
    %c0_i32 = arith.constant 0 : i32
    %2 = arith.minsi %1, %c0_i32 : i32
    %c0_i32_0 = arith.constant 0 : i32
    %c0_i32_1 = arith.constant 0 : i32
    return %2, %c0_i32_0 : i32, i32
  }
  func.func @transform_2(%arg0: i32, %arg1: i32) -> (i32, i32, i32) {
    %c0_i32 = arith.constant 0 : i32
    %c0_i32_0 = arith.constant 0 : i32
    %c0_i32_1 = arith.constant 0 : i32
    return %arg0, %c0_i32, %c0_i32_0 : i32, i32, i32
  }
}

</mosaic_0001>

<bundles_post_ra>
// kernel: tpu_custom_call.1
= control target key start
LH: loop header
LB: loop body
LE: loop exit
PB: predicated region body
PF: predicated region fallthrough
CT: control target
= control target key end

     0   :  { %7 = vsyncpa [#allocation3], 0  ;;  %s242_s0 = inlined_call_operand.hbm [shape: f32[16,128], index: 0, kind: input, shape index: {}]   ;;  %s243_s1 = inlined_call_operand.hbm [shape: f32[16,128], index: 1, kind: input, shape index: {}]   ;;  %s244_s2 = inlined_call_operand.hbm [shape: s32[1,8,128], index: 2, kind: output, shape index: {}]  }
   0x1   :  { %8 = vsyncpa [#allocation6], 0 }
   0x2   :  { %9 = vsyncpa [#allocation4], 0  ;;  %s184_s9 = smov [#allocation2]   ;;  %s112_s13 = scalar_lea.hbm %s242_s0, 256 }
   0x3   :  { %s21_s10 = sshll.u32 %s184_s9, 4  ;;  %p113_p0 = scmp.ne.s32.totalorder %s242_s0, %s112_s13  ;;  %s22_s10 = int_to_ptr.vmem [resolvable:$true] %s21_s10 }
   0x4   :  { %p116_p1 = scmp.lt.u32.totalorder %s112_s13, %s242_s0 }
   0x6   :  { %p118_p2 = pnand %p116_p1, %p113_p0 }
   0x8   :  { %121 = shalt.err (!%p118_p2)
}
   0x9   :  { %s122_s18 = scalar_lea.vmem %s22_s10, 256  ;;  %p127_p4 = scmp.lt.s32.totalorder %s22_s10, %s22_s10 }
   0xa   :  { %p123_p3 = scmp.ne.s32.totalorder %s22_s10, %s122_s18  ;;  %p128_p5 = scmp.lt.s32.totalorder %s122_s18, %s122_s18 }
   0xc   :  { %p129_p6 = por %p128_p5, %p127_p4 }
   0xe   :  { %p130_p7 = pnand %p129_p6, %p123_p3 }
  0x10   :  { %133 = shalt.err (!%p130_p7)
}
  0x11   :  { %s185_s19 = smov 128   ;;  %s186_s20 = smov 8  }
  0x12   :  { %27 = dma.hbm_to_vmem [thread:$0]  %s242_s0, 256, %s22_s10, [#allocation3], %s185_s19, %s185_s19, %s186_s20  }
  0x13   :  { %s187_s23 = smov [#allocation5]   ;;  %s134_s27 = scalar_lea.hbm %s243_s1, 256 }
  0x14   :  { %s39_s24 = sshll.u32 %s187_s23, 4  ;;  %p135_p8 = scmp.ne.s32.totalorder %s243_s1, %s134_s27  ;;  %s40_s24 = int_to_ptr.vmem [resolvable:$true] %s39_s24 }
  0x15   :  { %p138_p9 = scmp.lt.u32.totalorder %s134_s27, %s243_s1 }
  0x17   :  { %p140_p10 = pnand %p138_p9, %p135_p8 }
  0x19   :  { %143 = shalt.err (!%p140_p10)
}
  0x1a   :  { %s144_s4 = scalar_lea.vmem %s40_s24, 256  ;;  %p149_p12 = scmp.lt.s32.totalorder %s40_s24, %s40_s24 }
  0x1b   :  { %p145_p11 = scmp.ne.s32.totalorder %s40_s24, %s144_s4  ;;  %p150_p13 = scmp.lt.s32.totalorder %s144_s4, %s144_s4 }
  0x1d   :  { %p151_p0 = por %p150_p13, %p149_p12 }
  0x1f   :  { %p152_p1 = pnand %p151_p0, %p145_p11 }
  0x21   :  { %155 = shalt.err (!%p152_p1)
}
  0x22   :  { %45 = dma.hbm_to_vmem [thread:$0]  %s243_s1, 256, %s40_s24, [#allocation6], %s185_s19, %s185_s19, %s186_s20  }
  0x23   :  { %178 = dma.done.wait [#allocation3], 256  }
  0x24   :  { %179 = vsyncadd [#allocation3], 4294967040 }
  0x25   :  { %180 = dma.done.wait [#allocation6], 256  }
  0x26   :  { %181 = vsyncadd [#allocation6], 4294967040  ;;  %v65_v0 = vld [vmem:[#allocation2] sm:$0xff]  ;;  %v66_v1 = vld [vmem:[#allocation2 + $0x8] sm:$0xff]  ;;  %v188_v4 = vmov 0.0   ;;  %v189_v7 = vmov 0  }
  0x27   :  { %v67_v2 = vld [vmem:[#allocation5] sm:$0xff]  ;;  %v68_v3 = vld [vmem:[#allocation5 + $0x8] sm:$0xff]  ;;  %vm69_vm0 = vcmp.gt.f32.partialorder %v65_v0, 0.5  ;;  %vm70_vm1 = vcmp.gt.f32.partialorder %v66_v1, 0.5  ;;  %s190_s6 = smov [#allocation7]  }
  0x28   :  { %v103_v5 = vsel %vm69_vm0, 1.0, %v188_v4  ;;  %v104_v6 = vsel %vm70_vm1, 1.0, %v188_v4  ;;  %s89_s1 = sshll.u32 %s190_s6, 4  ;;  %s90_s1 = int_to_ptr.vmem [resolvable:$true] %s89_s1 }
  0x29   :  { %vm75_vm2 = vcmp.eq.f32.partialorder %v67_v2, %v103_v5  ;;  %vm76_vm3 = vcmp.eq.f32.partialorder %v68_v3, %v104_v6  ;;  %s156_s7 = scalar_lea.vmem %s90_s1, 128  ;;  %p161_p3 = scmp.lt.s32.totalorder %s90_s1, %s90_s1 }
  0x2a   :  { %v77_v8 = vsel %vm75_vm2, 1, %v189_v7  ;;  %v78_v9 = vsel %vm76_vm3, 1, %v189_v7  ;;  %p157_p2 = scmp.ne.s32.totalorder %s90_s1, %s156_s7  ;;  %p162_p4 = scmp.lt.s32.totalorder %s156_s7, %s156_s7 }
  0x2b   :  { %v79_v10 = vadd.s32 %v78_v9, %v77_v8 }
  0x2c   :  { %p163_p5 = por %p162_p4, %p161_p3 }
  0x2d   :  { %82 = vst [vmem:[#allocation7] sm:$0xff] %v79_v10 }
  0x2e   :  { %p164_p6 = pnand %p163_p5, %p157_p2 }
  0x30   :  { %167 = shalt.err (!%p164_p6)
}
  0x31   :  { %s168_s10 = scalar_lea.hbm %s244_s2, 128 }
  0x32   :  { %p169_p7 = scmp.ne.s32.totalorder %s244_s2, %s168_s10  ;;  %p172_p8 = scmp.lt.u32.totalorder %s168_s10, %s244_s2 }
  0x34   :  { %p174_p9 = pnand %p172_p8, %p169_p7 }
  0x36   :  { %177 = shalt.err (!%p174_p9)
}
  0x37   :  { %92 = dma.vmem_to_hbm [thread:$0]  %s90_s1, 128, %s244_s2, [#allocation4]  }
  0x38   :  { %182 = dma.done.wait [#allocation4], 128  }
  0x39   :  { %183 = vsyncadd [#allocation4], 4294967168 }
  0x3a   :  { %96 = vsyncpa [#allocation3], 1 }
  0x3b   :  { %97 = vsyncpa [#allocation6], 1 }
  0x3c   :  { %98 = vsyncpa [#allocation4], 1 }

</bundles_post_ra>
